<compile_context>
chip_gen: v5e
topology: v5e:2x2
jax: 0.10.0
libtpu: 0.0.40
codegen_flags: <defaults>
</compile_context>

<pallas_src>
import functools

import jax
import jax.numpy as jnp
from jax.experimental import pallas as pl
from jax.experimental.pallas import tpu as pltpu


_PADOFF = 8  # sublane-aligned offset at which real activation rows live in scratch


# ----------------------------------------------------------------------------
# Fused Level kernel
# ----------------------------------------------------------------------------
def _level_kernel(xp_ref, w_ref, p_ref, out_ref, buf, *,
                  num_hidden, residual, nlin_type, bnorm, eps,
                  n, h, w_sp, c_hid, c_out):
    """Fused Level forward.

    xp_ref : [h+2, n*w_sp*c_hid]        f32  input, lane = (n, w, c), H zero-padded by 1
    w_ref  : [num_hidden+1, 3*L, Lout]  bf16 per-layer fused banded conv matrices
                                             (3 kernel rows stacked on the contraction
                                             axis, block-diagonal over the batch)
    p_ref  : [3*(num_hidden+1), Lout]   f32  bias/gamma/beta, lane-broadcast rows
    out_ref: [h//2, n*(w_sp//2)*c_out]  f32  lane-dense 128-wide output tile
    buf    : [h+2*_PADOFF, n*w_sp*c_hid] f32 single VMEM pad for hidden activations
    """
    lanes = n * w_sp * c_hid
    ho = h // 2

    def act(y):
        if nlin_type == 1:
            return jnp.maximum(y, 0.0)                       # torch.relu
        # sigmoid: exp (EUP) + approx reciprocal (EUP) instead of a VALU divide.
        return pl.reciprocal(1.0 + jnp.exp(-y), approx=True)

    def lane_allreduce(v, n_ch):
        # Butterfly all-reduce over the lane groups (period n_ch) on the XLU:
        # after log2(lanes/n_ch) roll+add steps every lane holds the per-channel
        # total, already broadcast across lanes -> no reduction dots, no tiles.
        total_lanes = v.shape[-1]
        step = n_ch
        while step < total_lanes:
            v = v + pltpu.roll(v, shift=step, axis=1)
            step *= 2
        return v

    def batchnorm(y, n_ch, g_row, be_row):
        # y: [rows, reps*n_ch] with lane = group*n_ch + c.  Training-mode biased
        # batch stats reduce over rows (H) and lane groups (N*W), exact f32.
        rows, yl = y.shape
        count = rows * (yl // n_ch)                          # = N*H*W per channel
        s = jnp.sum(y, axis=0, keepdims=True)                # [1, lanes]
        mean_b = lane_allreduce(s, n_ch) * (1.0 / count)
        d = y - mean_b
        ss = jnp.sum(d * d, axis=0, keepdims=True)
        var_b = lane_allreduce(ss, n_ch) * (1.0 / count)
        return d * jax.lax.rsqrt(var_b + eps) * g_row + be_row

    def conv(layer, slabs):
        # ONE fused bf16 MXU matmul per layer: [rows, 3*lanes] x [3*lanes, Lout],
        # f32 accumulation.  The 3 kernel-row slabs are concatenated on lanes in
        # the same order the weight blocks were stacked host-side.
        lhs = jnp.concatenate(slabs, axis=-1)
        return jnp.dot(lhs, w_ref[layer], preferred_element_type=jnp.float32)

    # Zero only the two halo rows the convs actually read.
    zero_row = jnp.zeros((1, lanes), buf.dtype)
    buf[_PADOFF - 1:_PADOFF, :] = zero_row
    buf[_PADOFF + h:_PADOFF + h + 1, :] = zero_row

    # ---- hidden stride-1 Conv blocks ----------------------------------------
    for l in range(num_hidden):
        if l == 0:
            slabs = [xp_ref[i:i + h, :].astype(jnp.bfloat16) for i in range(3)]
        else:
            slabs = [buf[_PADOFF - 1 + i:_PADOFF - 1 + i + h, :].astype(jnp.bfloat16)
                     for i in range(3)]
        y = conv(l, slabs)
        y = y + p_ref[3 * l:3 * l + 1, :]                    # conv bias
        y = act(y)
        if bnorm:
            y = batchnorm(y, c_hid,
                          p_ref[3 * l + 1:3 * l + 2, :],
                          p_ref[3 * l + 2:3 * l + 3, :])
        if residual and l == num_hidden - 1:                 # fused residual add
            y = y + xp_ref[1:1 + h, :]
        buf[_PADOFF:_PADOFF + h, :] = y

    # ---- final stride-2 Conv block -------------------------------------------
    last = num_hidden
    # H stride-2 = one strided sublane read per kernel row (W stride is folded
    # into the banded weight matrix).
    slabs = [buf[pl.ds(_PADOFF - 1 + i, ho, 2), :].astype(jnp.bfloat16)
             for i in range(3)]
    y = conv(last, slabs)
    y = y + p_ref[3 * last:3 * last + 1, :]
    y = act(y)
    if bnorm:
        y = batchnorm(y, c_out,
                      p_ref[3 * last + 1:3 * last + 2, :],
                      p_ref[3 * last + 2:3 * last + 3, :])
    out_ref[...] = y.astype(out_ref.dtype)                   # [ho, 128] lane-dense


# ----------------------------------------------------------------------------
# Wrapper: weight folding + pallas_call
# ----------------------------------------------------------------------------
def _band_matrix(w_row, stride, w_in, w_out):
    """Fold the W window, W zero-padding and W stride of one conv kernel row
    into a banded matrix  M[(w,cin),(wo,cout)] = w_row[j,cin,cout] with
    j = w - stride*wo + pad  (zero outside the 3-tap band / the valid range)."""
    kw, cin, cout = w_row.shape
    pad = kw // 2
    j_idx = jnp.arange(kw)[:, None, None]
    wo_idx = jnp.arange(w_out)[None, :, None]
    w_idx = jnp.arange(w_in)[None, None, :]
    sel = (w_idx == stride * wo_idx + j_idx - pad).astype(w_row.dtype)  # [kw, wout, win]
    m = jnp.einsum("jow,jcd->wcod", sel, w_row)              # [win, cin, wout, cout]
    return m.reshape(w_in * cin, w_out * cout)


def _pack_layer_matrix(wgt, stride, n, w_in):
    """One conv layer -> ONE [3*n*w_in*cin, n*wout*cout] matrix: per kernel row,
    a banded matrix (W window/pad/stride folded in) made block-diagonal over the
    batch (batch lives on the lane axis), then the 3 kernel rows are stacked
    along the contraction axis so the kernel needs a single matmul per layer."""
    kh, kw, cin, cout = wgt.shape
    w_out = w_in // stride
    eye_n = jnp.eye(n, dtype=wgt.dtype)
    blocks = []
    for i in range(kh):
        band = _band_matrix(wgt[i], stride, w_in, w_out)     # [w_in*cin, w_out*cout]
        bd = jnp.einsum("nm,ab->namb", eye_n, band)
        blocks.append(bd.reshape(n * w_in * cin, n * w_out * cout))
    return jnp.concatenate(blocks, axis=0)


def level_forward(x_nchw, params, *, residual, nlin_type, bnorm, eps=1e-5):
    """params: list of (w[3,3,Cin,Cout], b, gamma, beta); last entry = stride-2
    Conv with Cout = 2*planes.  x_nchw: [N, Cin, H, W] (PyTorch layout)."""
    # TODO(synk): the PyTorch forward also print()s tensor shapes (side effect
    # only); omitted here.
    n, cin, h, w_sp = x_nchw.shape
    num_hidden = len(params) - 1
    assert num_hidden >= 1
    c_hid = params[0][0].shape[-1]
    c_out = params[-1][0].shape[-1]
    assert cin == c_hid and c_out == 2 * c_hid               # Level structure (residual needs it)
    ho, wo = h // 2, w_sp // 2
    # BN lane butterfly needs a power-of-two number of (N*W) lane groups.
    assert (n * w_sp) & (n * w_sp - 1) == 0
    lanes = n * w_sp * c_hid                                 # 128 at the demo size
    lanes_out = n * wo * c_out                               # == lanes (c_out = 2*c_hid)

    # Layout glue (one-off, tiny): NCHW -> [H, N, W, C] with (N,W,C) flattened
    # onto the lane axis (fills all 128 lanes at N=2,W=16,C=4), H padded by 1.
    x_lane = jnp.transpose(x_nchw, (2, 0, 3, 1)).reshape(h, lanes)
    xp = jnp.pad(x_lane, ((1, 1), (0, 0)))                   # [H+2, lanes] f32

    # Pack all conv weights as ONE fused [3*lanes, lanes_out] bf16 matrix per
    # layer and all bias/gamma/beta as lane-broadcast f32 rows: two operands
    # total for every layer of the Level.
    mats, vecs = [], []
    for li, (wgt, b, g, be) in enumerate(params):
        stride = 2 if li == num_hidden else 1
        w_out = w_sp // stride
        mats.append(_pack_layer_matrix(wgt, stride, n, w_sp))
        vecs += [jnp.tile(b, n * w_out), jnp.tile(g, n * w_out), jnp.tile(be, n * w_out)]
    wq = jnp.stack(mats).astype(jnp.bfloat16)                # [L+1, 3*lanes, lanes_out]
    pv = jnp.stack(vecs).astype(jnp.float32)                 # [3*(L+1), lanes_out]

    kernel = functools.partial(
        _level_kernel, num_hidden=num_hidden, residual=residual,
        nlin_type=nlin_type, bnorm=bnorm, eps=eps,
        n=n, h=h, w_sp=w_sp, c_hid=c_hid, c_out=c_out)

    out2d = pl.pallas_call(
        kernel,
        out_shape=jax.ShapeDtypeStruct((ho, lanes_out), jnp.float32),
        grid=(1,),
        in_specs=[
            pl.BlockSpec(xp.shape, lambda i: (0, 0)),
            pl.BlockSpec(wq.shape, lambda i: (0, 0, 0)),
            pl.BlockSpec(pv.shape, lambda i: (0, 0)),
        ],
        out_specs=pl.BlockSpec((ho, lanes_out), lambda i: (0, 0)),
        scratch_shapes=[
            pltpu.VMEM((h + 2 * _PADOFF, lanes), jnp.float32),
        ],
        # Single grid step: all operands (~320 KiB) + the 16 KiB scratch fit in
        # VMEM on every generation.  If scaled up (larger N/H/W/C or multiple
        # Levels), add a leading "parallel" grid axis so the second v7x
        # TensorCore does work (with a cross-core BN partial-sum combine), and
        # set vmem_limit_bytes explicitly against v7x's 64 MiB / 32 MiB-scoped
        # budget instead of keeping everything resident.
        compiler_params=pltpu.CompilerParams(dimension_semantics=("arbitrary",)),
    )(xp, wq, pv)

    out = out2d.reshape(ho, n, wo, c_out)                    # [Ho, N, Wo, Cout]
    return jnp.transpose(out, (1, 3, 0, 2))                  # -> NCHW


# ----------------------------------------------------------------------------
# Plain-JAX reference (same bf16 operand / f32 accumulation precision as the
# kernel, so the comparison tolerance stays tight).
# ----------------------------------------------------------------------------
def conv_block_ref(x_nhwc, w, b, gamma, beta, *, stride, nlin_type, bnorm, eps=1e-5):
    n, hh, ww, cin = x_nhwc.shape
    kh, kw, _, cout = w.shape
    pad = kh // 2
    xp = jnp.pad(x_nhwc, ((0, 0), (pad, pad), (pad, pad), (0, 0)))
    hout = (hh + 2 * pad - kh) // stride + 1
    wout = (ww + 2 * pad - kw) // stride + 1
    cols = []
    for i in range(kh):
        for j in range(kw):
            cols.append(xp[:, i:i + (hout - 1) * stride + 1:stride,
                           j:j + (wout - 1) * stride + 1:stride, :])
    patches = jnp.concatenate(cols, axis=-1).reshape(n * hout * wout, kh * kw * cin)
    w2d = w.reshape(kh * kw * cin, cout)
    y = jnp.dot(patches.astype(jnp.bfloat16), w2d.astype(jnp.bfloat16),
                preferred_element_type=jnp.float32).reshape(n, hout, wout, cout)
    y = y + b
    y = jnp.maximum(y, 0.0) if nlin_type == 1 else jax.nn.sigmoid(y)
    if bnorm:
        mean = y.mean(axis=(0, 1, 2), keepdims=True)
        var = y.var(axis=(0, 1, 2), keepdims=True)
        y = (y - mean) * jax.lax.rsqrt(var + eps) * gamma + beta
    return y


def level_forward_ref(x_nchw, params, *, residual, nlin_type, bnorm):
    x = jnp.transpose(x_nchw, (0, 2, 3, 1))
    h = x
    for (w, b, g, be) in params[:-1]:
        h = conv_block_ref(h, w, b, g, be, stride=1, nlin_type=nlin_type, bnorm=bnorm)
    if residual:
        h = h + x
    w, b, g, be = params[-1]
    out = conv_block_ref(h, w, b, g, be, stride=2, nlin_type=nlin_type, bnorm=bnorm)
    return jnp.transpose(out, (0, 3, 1, 2))


# ----------------------------------------------------------------------------
# Main
# ----------------------------------------------------------------------------
if __name__ == "__main__":
    # Level(numOfLayers=2, inplanes=4, planes=4, kernelSize=3,
    #       nLinType_=1, bNorm_=True, residual_=True)
    num_layers, inplanes, planes, ksize = 2, 4, 4, 3
    nlin_type, bnorm, residual = 1, True, True

    key = jax.random.PRNGKey(0)
    params = []
    for _ in range(num_layers):                              # stride-1: in -> planes
        key, kw, kb = jax.random.split(key, 3)
        w = 0.1 * jax.random.normal(kw, (ksize, ksize, inplanes, planes), jnp.float32)
        b = 0.1 * jax.random.normal(kb, (planes,), jnp.float32)
        params.append((w, b, jnp.ones((planes,), jnp.float32),
                       jnp.zeros((planes,), jnp.float32)))
    key, kw, kb = jax.random.split(key, 3)                   # stride-2: in -> planes*2
    w = 0.1 * jax.random.normal(kw, (ksize, ksize, inplanes, planes * 2), jnp.float32)
    b = 0.1 * jax.random.normal(kb, (planes * 2,), jnp.float32)
    params.append((w, b, jnp.ones((planes * 2,), jnp.float32),
                   jnp.zeros((planes * 2,), jnp.float32)))

    key, kx = jax.random.split(key)
    x = jax.random.normal(kx, (2, 4, 16, 16), jnp.float32)   # NCHW

    out = jax.block_until_ready(level_forward(x, params, residual=residual,
                                              nlin_type=nlin_type, bnorm=bnorm))
    ref = jax.block_until_ready(level_forward_ref(x, params, residual=residual,
                                                  nlin_type=nlin_type, bnorm=bnorm))

    assert out.shape == (2, 8, 8, 8), out.shape
    err_max = float(jnp.max(jnp.abs(out - ref)))
    err_mean = float(jnp.mean(jnp.abs(out - ref)))
    assert err_max < 1e-2, err_max    # reference uses matching bf16 operand precision
    assert err_mean < 1e-3, err_mean

    print("KERNEL_OK")
</pallas_src>

<mosaic_0001>
module attributes {stable_mosaic.version = 11 : i64} {
  func.func @_level_kernel(%arg0: i32, %arg1: memref<18x128xf32, #tpu.memory_space<vmem>>, %arg2: memref<3x384x128xbf16, #tpu.memory_space<vmem>>, %arg3: memref<9x128xf32, #tpu.memory_space<vmem>>, %arg4: memref<8x128xf32, #tpu.memory_space<vmem>>, %arg5: memref<32x128xf32, #tpu.memory_space<vmem>>) attributes {dimension_semantics = [#tpu.dimension_semantics<arbitrary>], iteration_bounds = array<i64: 1>, scalar_prefetch = 0 : i64, scratch_operands = 1 : i64, tpu.core_type = #tpu.core_type<tc>, window_params = [{pipeline_mode = #tpu.pipeline_mode<synchronous>, transform_indices = @transform_0, window_bounds = array<i64: 18, 128>}, {pipeline_mode = #tpu.pipeline_mode<synchronous>, transform_indices = @transform_1, window_bounds = array<i64: 3, 384, 128>}, {pipeline_mode = #tpu.pipeline_mode<synchronous>, transform_indices = @transform_2, window_bounds = array<i64: 9, 128>}, {pipeline_mode = #tpu.pipeline_mode<synchronous>, transform_indices = @transform_3, window_bounds = array<i64: 8, 128>}]} {
    %cst = arith.constant 0.000000e+00 : f32
    %0 = vector.broadcast %cst : f32 to vector<1x128xf32>
    %c7 = arith.constant 7 : index
    %c0 = arith.constant 0 : index
    %1 = vector.load %arg5[%c7, %c0] : memref<32x128xf32, #tpu.memory_space<vmem>>, vector<1x128xf32>
    tpu.vector_store %arg5[%c7, %c0], %0 {strides = array<i32>} : memref<32x128xf32, #tpu.memory_space<vmem>>, vector<1x128xf32>,
    %c24 = arith.constant 24 : index
    %c0_0 = arith.constant 0 : index
    %2 = vector.load %arg5[%c24, %c0_0] : memref<32x128xf32, #tpu.memory_space<vmem>>, vector<1x128xf32>
    tpu.vector_store %arg5[%c24, %c0_0], %0 {strides = array<i32>} : memref<32x128xf32, #tpu.memory_space<vmem>>, vector<1x128xf32>,
    %c0_1 = arith.constant 0 : index
    %c0_2 = arith.constant 0 : index
    %3 = vector.load %arg1[%c0_1, %c0_2] : memref<18x128xf32, #tpu.memory_space<vmem>>, vector<16x128xf32>
    %4 = arith.truncf %3 : vector<16x128xf32> to vector<16x128xbf16>
    %c1 = arith.constant 1 : index
    %c0_3 = arith.constant 0 : index
    %5 = vector.load %arg1[%c1, %c0_3] : memref<18x128xf32, #tpu.memory_space<vmem>>, vector<16x128xf32>
    %6 = arith.truncf %5 : vector<16x128xf32> to vector<16x128xbf16>
    %c2 = arith.constant 2 : index
    %c0_4 = arith.constant 0 : index
    %7 = vector.load %arg1[%c2, %c0_4] : memref<18x128xf32, #tpu.memory_space<vmem>>, vector<16x128xf32>
    %8 = arith.truncf %7 : vector<16x128xf32> to vector<16x128xbf16>
    %9 = tpu.concatenate %4, %6, %8 in 1 : vector<16x128xbf16>, vector<16x128xbf16>, vector<16x128xbf16> -> vector<16x384xbf16>
    %c0_5 = arith.constant 0 : index
    %c0_6 = arith.constant 0 : index
    %c0_7 = arith.constant 0 : index
    %10 = vector.load %arg2[%c0_5, %c0_6, %c0_7] : memref<3x384x128xbf16, #tpu.memory_space<vmem>>, vector<1x384x128xbf16>
    %11 = vector.shape_cast %10 : vector<1x384x128xbf16> to vector<384x128xbf16>
    %cst_8 = arith.constant dense<0.000000e+00> : vector<16x128xf32>
    %12 = tpu.matmul %9, %11, %cst_8 {dimension_numbers = #tpu.dot_dimension_numbers<[1], [0], [0], [1], [0, 0, 1, 1], [], []>} : vector<16x384xbf16>, vector<384x128xbf16>, vector<16x128xf32> -> vector<16x128xf32>
    %c0_9 = arith.constant 0 : index
    %c0_10 = arith.constant 0 : index
    %13 = vector.load %arg3[%c0_9, %c0_10] : memref<9x128xf32, #tpu.memory_space<vmem>>, vector<1x128xf32>
    %14 = vector.broadcast %13 : vector<1x128xf32> to vector<16x128xf32>
    %15 = arith.addf %12, %14 : vector<16x128xf32>
    %cst_11 = arith.constant 0.000000e+00 : f32
    %16 = vector.broadcast %cst_11 : f32 to vector<16x128xf32>
    %17 = arith.maximumf %15, %16 : vector<16x128xf32>
    %c1_12 = arith.constant 1 : index
    %c0_13 = arith.constant 0 : index
    %18 = vector.load %arg3[%c1_12, %c0_13] : memref<9x128xf32, #tpu.memory_space<vmem>>, vector<1x128xf32>
    %c2_14 = arith.constant 2 : index
    %c0_15 = arith.constant 0 : index
    %19 = vector.load %arg3[%c2_14, %c0_15] : memref<9x128xf32, #tpu.memory_space<vmem>>, vector<1x128xf32>
    %cst_16 = arith.constant dense<0.000000e+00> : vector<128xf32>
    %20 = vector.multi_reduction <add>, %17, %cst_16 [0] : vector<16x128xf32> to vector<128xf32>
    %21 = vector.shape_cast %20 : vector<128xf32> to vector<1x128xf32>
    %c4_i32 = arith.constant 4 : i32
    %22 = tpu.dynamic_rotate %21 by %c4_i32 dim 1 : vector<1x128xf32>, i32 -> vector<1x128xf32>
    %23 = arith.addf %21, %22 : vector<1x128xf32>
    %c8_i32 = arith.constant 8 : i32
    %24 = tpu.dynamic_rotate %23 by %c8_i32 dim 1 : vector<1x128xf32>, i32 -> vector<1x128xf32>
    %25 = arith.addf %23, %24 : vector<1x128xf32>
    %c16_i32 = arith.constant 16 : i32
    %26 = tpu.dynamic_rotate %25 by %c16_i32 dim 1 : vector<1x128xf32>, i32 -> vector<1x128xf32>
    %27 = arith.addf %25, %26 : vector<1x128xf32>
    %c32_i32 = arith.constant 32 : i32
    %28 = tpu.dynamic_rotate %27 by %c32_i32 dim 1 : vector<1x128xf32>, i32 -> vector<1x128xf32>
    %29 = arith.addf %27, %28 : vector<1x128xf32>
    %c64_i32 = arith.constant 64 : i32
    %30 = tpu.dynamic_rotate %29 by %c64_i32 dim 1 : vector<1x128xf32>, i32 -> vector<1x128xf32>
    %31 = arith.addf %29, %30 : vector<1x128xf32>
    %cst_17 = arith.constant 0.001953125 : f32
    %32 = vector.broadcast %cst_17 : f32 to vector<1x128xf32>
    %33 = arith.mulf %31, %32 : vector<1x128xf32>
    %34 = vector.broadcast %33 : vector<1x128xf32> to vector<16x128xf32>
    %35 = arith.subf %17, %34 : vector<16x128xf32>
    %36 = arith.mulf %35, %35 : vector<16x128xf32>
    %cst_18 = arith.constant dense<0.000000e+00> : vector<128xf32>
    %37 = vector.multi_reduction <add>, %36, %cst_18 [0] : vector<16x128xf32> to vector<128xf32>
    %38 = vector.shape_cast %37 : vector<128xf32> to vector<1x128xf32>
    %c4_i32_19 = arith.constant 4 : i32
    %39 = tpu.dynamic_rotate %38 by %c4_i32_19 dim 1 : vector<1x128xf32>, i32 -> vector<1x128xf32>
    %40 = arith.addf %38, %39 : vector<1x128xf32>
    %c8_i32_20 = arith.constant 8 : i32
    %41 = tpu.dynamic_rotate %40 by %c8_i32_20 dim 1 : vector<1x128xf32>, i32 -> vector<1x128xf32>
    %42 = arith.addf %40, %41 : vector<1x128xf32>
    %c16_i32_21 = arith.constant 16 : i32
    %43 = tpu.dynamic_rotate %42 by %c16_i32_21 dim 1 : vector<1x128xf32>, i32 -> vector<1x128xf32>
    %44 = arith.addf %42, %43 : vector<1x128xf32>
    %c32_i32_22 = arith.constant 32 : i32
    %45 = tpu.dynamic_rotate %44 by %c32_i32_22 dim 1 : vector<1x128xf32>, i32 -> vector<1x128xf32>
    %46 = arith.addf %44, %45 : vector<1x128xf32>
    %c64_i32_23 = arith.constant 64 : i32
    %47 = tpu.dynamic_rotate %46 by %c64_i32_23 dim 1 : vector<1x128xf32>, i32 -> vector<1x128xf32>
    %48 = arith.addf %46, %47 : vector<1x128xf32>
    %cst_24 = arith.constant 0.001953125 : f32
    %49 = vector.broadcast %cst_24 : f32 to vector<1x128xf32>
    %50 = arith.mulf %48, %49 : vector<1x128xf32>
    %cst_25 = arith.constant 9.99999974E-6 : f32
    %51 = vector.broadcast %cst_25 : f32 to vector<1x128xf32>
    %52 = arith.addf %50, %51 : vector<1x128xf32>
    %53 = math.rsqrt %52 : vector<1x128xf32>
    %54 = vector.broadcast %53 : vector<1x128xf32> to vector<16x128xf32>
    %55 = arith.mulf %35, %54 : vector<16x128xf32>
    %56 = vector.broadcast %18 : vector<1x128xf32> to vector<16x128xf32>
    %57 = arith.mulf %55, %56 : vector<16x128xf32>
    %58 = vector.broadcast %19 : vector<1x128xf32> to vector<16x128xf32>
    %59 = arith.addf %57, %58 : vector<16x128xf32>
    %c8 = arith.constant 8 : index
    %c0_26 = arith.constant 0 : index
    %60 = vector.load %arg5[%c8, %c0_26] : memref<32x128xf32, #tpu.memory_space<vmem>>, vector<16x128xf32>
    tpu.vector_store %arg5[%c8, %c0_26], %59 {strides = array<i32>} : memref<32x128xf32, #tpu.memory_space<vmem>>, vector<16x128xf32>,
    %c7_27 = arith.constant 7 : index
    %c0_28 = arith.constant 0 : index
    %61 = vector.load %arg5[%c7_27, %c0_28] : memref<32x128xf32, #tpu.memory_space<vmem>>, vector<16x128xf32>
    %62 = arith.truncf %61 : vector<16x128xf32> to vector<16x128xbf16>
    %c8_29 = arith.constant 8 : index
    %c0_30 = arith.constant 0 : index
    %63 = vector.load %arg5[%c8_29, %c0_30] : memref<32x128xf32, #tpu.memory_space<vmem>>, vector<16x128xf32>
    %64 = arith.truncf %63 : vector<16x128xf32> to vector<16x128xbf16>
    %c9 = arith.constant 9 : index
    %c0_31 = arith.constant 0 : index
    %65 = vector.load %arg5[%c9, %c0_31] : memref<32x128xf32, #tpu.memory_space<vmem>>, vector<16x128xf32>
    %66 = arith.truncf %65 : vector<16x128xf32> to vector<16x128xbf16>
    %67 = tpu.concatenate %62, %64, %66 in 1 : vector<16x128xbf16>, vector<16x128xbf16>, vector<16x128xbf16> -> vector<16x384xbf16>
    %c1_32 = arith.constant 1 : index
    %c0_33 = arith.constant 0 : index
    %c0_34 = arith.constant 0 : index
    %68 = vector.load %arg2[%c1_32, %c0_33, %c0_34] : memref<3x384x128xbf16, #tpu.memory_space<vmem>>, vector<1x384x128xbf16>
    %69 = vector.shape_cast %68 : vector<1x384x128xbf16> to vector<384x128xbf16>
    %cst_35 = arith.constant dense<0.000000e+00> : vector<16x128xf32>
    %70 = tpu.matmul %67, %69, %cst_35 {dimension_numbers = #tpu.dot_dimension_numbers<[1], [0], [0], [1], [0, 0, 1, 1], [], []>} : vector<16x384xbf16>, vector<384x128xbf16>, vector<16x128xf32> -> vector<16x128xf32>
    %c3 = arith.constant 3 : index
    %c0_36 = arith.constant 0 : index
    %71 = vector.load %arg3[%c3, %c0_36] : memref<9x128xf32, #tpu.memory_space<vmem>>, vector<1x128xf32>
    %72 = vector.broadcast %71 : vector<1x128xf32> to vector<16x128xf32>
    %73 = arith.addf %70, %72 : vector<16x128xf32>
    %cst_37 = arith.constant 0.000000e+00 : f32
    %74 = vector.broadcast %cst_37 : f32 to vector<16x128xf32>
    %75 = arith.maximumf %73, %74 : vector<16x128xf32>
    %c4 = arith.constant 4 : index
    %c0_38 = arith.constant 0 : index
    %76 = vector.load %arg3[%c4, %c0_38] : memref<9x128xf32, #tpu.memory_space<vmem>>, vector<1x128xf32>
    %c5 = arith.constant 5 : index
    %c0_39 = arith.constant 0 : index
    %77 = vector.load %arg3[%c5, %c0_39] : memref<9x128xf32, #tpu.memory_space<vmem>>, vector<1x128xf32>
    %cst_40 = arith.constant dense<0.000000e+00> : vector<128xf32>
    %78 = vector.multi_reduction <add>, %75, %cst_40 [0] : vector<16x128xf32> to vector<128xf32>
    %79 = vector.shape_cast %78 : vector<128xf32> to vector<1x128xf32>
    %c4_i32_41 = arith.constant 4 : i32
    %80 = tpu.dynamic_rotate %79 by %c4_i32_41 dim 1 : vector<1x128xf32>, i32 -> vector<1x128xf32>
    %81 = arith.addf %79, %80 : vector<1x128xf32>
    %c8_i32_42 = arith.constant 8 : i32
    %82 = tpu.dynamic_rotate %81 by %c8_i32_42 dim 1 : vector<1x128xf32>, i32 -> vector<1x128xf32>
    %83 = arith.addf %81, %82 : vector<1x128xf32>
    %c16_i32_43 = arith.constant 16 : i32
    %84 = tpu.dynamic_rotate %83 by %c16_i32_43 dim 1 : vector<1x128xf32>, i32 -> vector<1x128xf32>
    %85 = arith.addf %83, %84 : vector<1x128xf32>
    %c32_i32_44 = arith.constant 32 : i32
    %86 = tpu.dynamic_rotate %85 by %c32_i32_44 dim 1 : vector<1x128xf32>, i32 -> vector<1x128xf32>
    %87 = arith.addf %85, %86 : vector<1x128xf32>
    %c64_i32_45 = arith.constant 64 : i32
    %88 = tpu.dynamic_rotate %87 by %c64_i32_45 dim 1 : vector<1x128xf32>, i32 -> vector<1x128xf32>
    %89 = arith.addf %87, %88 : vector<1x128xf32>
    %cst_46 = arith.constant 0.001953125 : f32
    %90 = vector.broadcast %cst_46 : f32 to vector<1x128xf32>
    %91 = arith.mulf %89, %90 : vector<1x128xf32>
    %92 = vector.broadcast %91 : vector<1x128xf32> to vector<16x128xf32>
    %93 = arith.subf %75, %92 : vector<16x128xf32>
    %94 = arith.mulf %93, %93 : vector<16x128xf32>
    %cst_47 = arith.constant dense<0.000000e+00> : vector<128xf32>
    %95 = vector.multi_reduction <add>, %94, %cst_47 [0] : vector<16x128xf32> to vector<128xf32>
    %96 = vector.shape_cast %95 : vector<128xf32> to vector<1x128xf32>
    %c4_i32_48 = arith.constant 4 : i32
    %97 = tpu.dynamic_rotate %96 by %c4_i32_48 dim 1 : vector<1x128xf32>, i32 -> vector<1x128xf32>
    %98 = arith.addf %96, %97 : vector<1x128xf32>
    %c8_i32_49 = arith.constant 8 : i32
    %99 = tpu.dynamic_rotate %98 by %c8_i32_49 dim 1 : vector<1x128xf32>, i32 -> vector<1x128xf32>
    %100 = arith.addf %98, %99 : vector<1x128xf32>
    %c16_i32_50 = arith.constant 16 : i32
    %101 = tpu.dynamic_rotate %100 by %c16_i32_50 dim 1 : vector<1x128xf32>, i32 -> vector<1x128xf32>
    %102 = arith.addf %100, %101 : vector<1x128xf32>
    %c32_i32_51 = arith.constant 32 : i32
    %103 = tpu.dynamic_rotate %102 by %c32_i32_51 dim 1 : vector<1x128xf32>, i32 -> vector<1x128xf32>
    %104 = arith.addf %102, %103 : vector<1x128xf32>
    %c64_i32_52 = arith.constant 64 : i32
    %105 = tpu.dynamic_rotate %104 by %c64_i32_52 dim 1 : vector<1x128xf32>, i32 -> vector<1x128xf32>
    %106 = arith.addf %104, %105 : vector<1x128xf32>
    %cst_53 = arith.constant 0.001953125 : f32
    %107 = vector.broadcast %cst_53 : f32 to vector<1x128xf32>
    %108 = arith.mulf %106, %107 : vector<1x128xf32>
    %cst_54 = arith.constant 9.99999974E-6 : f32
    %109 = vector.broadcast %cst_54 : f32 to vector<1x128xf32>
    %110 = arith.addf %108, %109 : vector<1x128xf32>
    %111 = math.rsqrt %110 : vector<1x128xf32>
    %112 = vector.broadcast %111 : vector<1x128xf32> to vector<16x128xf32>
    %113 = arith.mulf %93, %112 : vector<16x128xf32>
    %114 = vector.broadcast %76 : vector<1x128xf32> to vector<16x128xf32>
    %115 = arith.mulf %113, %114 : vector<16x128xf32>
    %116 = vector.broadcast %77 : vector<1x128xf32> to vector<16x128xf32>
    %117 = arith.addf %115, %116 : vector<16x128xf32>
    %c1_55 = arith.constant 1 : index
    %c0_56 = arith.constant 0 : index
    %118 = vector.load %arg1[%c1_55, %c0_56] : memref<18x128xf32, #tpu.memory_space<vmem>>, vector<16x128xf32>
    %119 = arith.addf %117, %118 : vector<16x128xf32>
    %c8_57 = arith.constant 8 : index
    %c0_58 = arith.constant 0 : index
    %120 = vector.load %arg5[%c8_57, %c0_58] : memref<32x128xf32, #tpu.memory_space<vmem>>, vector<16x128xf32>
    tpu.vector_store %arg5[%c8_57, %c0_58], %119 {strides = array<i32>} : memref<32x128xf32, #tpu.memory_space<vmem>>, vector<16x128xf32>,
    %c7_59 = arith.constant 7 : index
    %c0_60 = arith.constant 0 : index
    %121 = tpu.strided_load %arg5[%c7_59, %c0_60] {strides = array<i32: 2, 1>} : memref<32x128xf32, #tpu.memory_space<vmem>>, vector<8x128xf32>
    %122 = arith.truncf %121 : vector<8x128xf32> to vector<8x128xbf16>
    %c8_61 = arith.constant 8 : index
    %c0_62 = arith.constant 0 : index
    %123 = tpu.strided_load %arg5[%c8_61, %c0_62] {strides = array<i32: 2, 1>} : memref<32x128xf32, #tpu.memory_space<vmem>>, vector<8x128xf32>
    %124 = arith.truncf %123 : vector<8x128xf32> to vector<8x128xbf16>
    %c9_63 = arith.constant 9 : index
    %c0_64 = arith.constant 0 : index
    %125 = tpu.strided_load %arg5[%c9_63, %c0_64] {strides = array<i32: 2, 1>} : memref<32x128xf32, #tpu.memory_space<vmem>>, vector<8x128xf32>
    %126 = arith.truncf %125 : vector<8x128xf32> to vector<8x128xbf16>
    %127 = tpu.concatenate %122, %124, %126 in 1 : vector<8x128xbf16>, vector<8x128xbf16>, vector<8x128xbf16> -> vector<8x384xbf16>
    %c2_65 = arith.constant 2 : index
    %c0_66 = arith.constant 0 : index
    %c0_67 = arith.constant 0 : index
    %128 = vector.load %arg2[%c2_65, %c0_66, %c0_67] : memref<3x384x128xbf16, #tpu.memory_space<vmem>>, vector<1x384x128xbf16>
    %129 = vector.shape_cast %128 : vector<1x384x128xbf16> to vector<384x128xbf16>
    %cst_68 = arith.constant dense<0.000000e+00> : vector<8x128xf32>
    %130 = tpu.matmul %127, %129, %cst_68 {dimension_numbers = #tpu.dot_dimension_numbers<[1], [0], [0], [1], [0, 0, 1, 1], [], []>} : vector<8x384xbf16>, vector<384x128xbf16>, vector<8x128xf32> -> vector<8x128xf32>
    %c6 = arith.constant 6 : index
    %c0_69 = arith.constant 0 : index
    %131 = vector.load %arg3[%c6, %c0_69] : memref<9x128xf32, #tpu.memory_space<vmem>>, vector<1x128xf32>
    %132 = vector.broadcast %131 : vector<1x128xf32> to vector<8x128xf32>
    %133 = arith.addf %130, %132 : vector<8x128xf32>
    %cst_70 = arith.constant 0.000000e+00 : f32
    %134 = vector.broadcast %cst_70 : f32 to vector<8x128xf32>
    %135 = arith.maximumf %133, %134 : vector<8x128xf32>
    %c7_71 = arith.constant 7 : index
    %c0_72 = arith.constant 0 : index
    %136 = vector.load %arg3[%c7_71, %c0_72] : memref<9x128xf32, #tpu.memory_space<vmem>>, vector<1x128xf32>
    %c8_73 = arith.constant 8 : index
    %c0_74 = arith.constant 0 : index
    %137 = vector.load %arg3[%c8_73, %c0_74] : memref<9x128xf32, #tpu.memory_space<vmem>>, vector<1x128xf32>
    %cst_75 = arith.constant dense<0.000000e+00> : vector<128xf32>
    %138 = vector.multi_reduction <add>, %135, %cst_75 [0] : vector<8x128xf32> to vector<128xf32>
    %139 = vector.shape_cast %138 : vector<128xf32> to vector<1x128xf32>
    %c8_i32_76 = arith.constant 8 : i32
    %140 = tpu.dynamic_rotate %139 by %c8_i32_76 dim 1 : vector<1x128xf32>, i32 -> vector<1x128xf32>
    %141 = arith.addf %139, %140 : vector<1x128xf32>
    %c16_i32_77 = arith.constant 16 : i32
    %142 = tpu.dynamic_rotate %141 by %c16_i32_77 dim 1 : vector<1x128xf32>, i32 -> vector<1x128xf32>
    %143 = arith.addf %141, %142 : vector<1x128xf32>
    %c32_i32_78 = arith.constant 32 : i32
    %144 = tpu.dynamic_rotate %143 by %c32_i32_78 dim 1 : vector<1x128xf32>, i32 -> vector<1x128xf32>
    %145 = arith.addf %143, %144 : vector<1x128xf32>
    %c64_i32_79 = arith.constant 64 : i32
    %146 = tpu.dynamic_rotate %145 by %c64_i32_79 dim 1 : vector<1x128xf32>, i32 -> vector<1x128xf32>
    %147 = arith.addf %145, %146 : vector<1x128xf32>
    %cst_80 = arith.constant 7.812500e-03 : f32
    %148 = vector.broadcast %cst_80 : f32 to vector<1x128xf32>
    %149 = arith.mulf %147, %148 : vector<1x128xf32>
    %150 = vector.broadcast %149 : vector<1x128xf32> to vector<8x128xf32>
    %151 = arith.subf %135, %150 : vector<8x128xf32>
    %152 = arith.mulf %151, %151 : vector<8x128xf32>
    %cst_81 = arith.constant dense<0.000000e+00> : vector<128xf32>
    %153 = vector.multi_reduction <add>, %152, %cst_81 [0] : vector<8x128xf32> to vector<128xf32>
    %154 = vector.shape_cast %153 : vector<128xf32> to vector<1x128xf32>
    %c8_i32_82 = arith.constant 8 : i32
    %155 = tpu.dynamic_rotate %154 by %c8_i32_82 dim 1 : vector<1x128xf32>, i32 -> vector<1x128xf32>
    %156 = arith.addf %154, %155 : vector<1x128xf32>
    %c16_i32_83 = arith.constant 16 : i32
    %157 = tpu.dynamic_rotate %156 by %c16_i32_83 dim 1 : vector<1x128xf32>, i32 -> vector<1x128xf32>
    %158 = arith.addf %156, %157 : vector<1x128xf32>
    %c32_i32_84 = arith.constant 32 : i32
    %159 = tpu.dynamic_rotate %158 by %c32_i32_84 dim 1 : vector<1x128xf32>, i32 -> vector<1x128xf32>
    %160 = arith.addf %158, %159 : vector<1x128xf32>
    %c64_i32_85 = arith.constant 64 : i32
    %161 = tpu.dynamic_rotate %160 by %c64_i32_85 dim 1 : vector<1x128xf32>, i32 -> vector<1x128xf32>
    %162 = arith.addf %160, %161 : vector<1x128xf32>
    %cst_86 = arith.constant 7.812500e-03 : f32
    %163 = vector.broadcast %cst_86 : f32 to vector<1x128xf32>
    %164 = arith.mulf %162, %163 : vector<1x128xf32>
    %cst_87 = arith.constant 9.99999974E-6 : f32
    %165 = vector.broadcast %cst_87 : f32 to vector<1x128xf32>
    %166 = arith.addf %164, %165 : vector<1x128xf32>
    %167 = math.rsqrt %166 : vector<1x128xf32>
    %168 = vector.broadcast %167 : vector<1x128xf32> to vector<8x128xf32>
    %169 = arith.mulf %151, %168 : vector<8x128xf32>
    %170 = vector.broadcast %136 : vector<1x128xf32> to vector<8x128xf32>
    %171 = arith.mulf %169, %170 : vector<8x128xf32>
    %172 = vector.broadcast %137 : vector<1x128xf32> to vector<8x128xf32>
    %173 = arith.addf %171, %172 : vector<8x128xf32>
    %c0_88 = arith.constant 0 : index
    %c0_89 = arith.constant 0 : index
    %174 = vector.load %arg4[%c0_88, %c0_89] : memref<8x128xf32, #tpu.memory_space<vmem>>, vector<8x128xf32>
    tpu.vector_store %arg4[%c0_88, %c0_89], %173 {strides = array<i32>} : memref<8x128xf32, #tpu.memory_space<vmem>>, vector<8x128xf32>,
    return
  }
  func.func @transform_0(%arg0: i32) -> (i32, i32) {
    %c0_i32 = arith.constant 0 : i32
    %c0_i32_0 = arith.constant 0 : i32
    %c0_i32_1 = arith.constant 0 : i32
    return %c0_i32, %c0_i32_0 : i32, i32
  }
  func.func @transform_1(%arg0: i32) -> (i32, i32, i32) {
    %c0_i32 = arith.constant 0 : i32
    %c0_i32_0 = arith.constant 0 : i32
    %c0_i32_1 = arith.constant 0 : i32
    %c0_i32_2 = arith.constant 0 : i32
    return %c0_i32, %c0_i32_0, %c0_i32_1 : i32, i32, i32
  }
  func.func @transform_2(%arg0: i32) -> (i32, i32) {
    %c0_i32 = arith.constant 0 : i32
    %c0_i32_0 = arith.constant 0 : i32
    %c0_i32_1 = arith.constant 0 : i32
    return %c0_i32, %c0_i32_0 : i32, i32
  }
  func.func @transform_3(%arg0: i32) -> (i32, i32) {
    %c0_i32 = arith.constant 0 : i32
    %c0_i32_0 = arith.constant 0 : i32
    %c0_i32_1 = arith.constant 0 : i32
    return %c0_i32, %c0_i32_0 : i32, i32
  }
}

</mosaic_0001>

<bundles_post_ra>
// kernel: tpu_custom_call.1
= control target key start
LH: loop header
LB: loop body
LE: loop exit
PB: predicated region body
PF: predicated region fallthrough
CT: control target
= control target key end

     0   :  { %8 = vsyncpa [#allocation4], 0  ;;  %s1672_s0 = inlined_call_operand.hbm [shape: f32[18,128], index: 0, kind: input, shape index: {}]   ;;  %s1673_s1 = inlined_call_operand.hbm [shape: bf16[3,384,128], index: 1, kind: input, shape index: {}]   ;;  %s1674_s2 = inlined_call_operand.hbm [shape: f32[9,128], index: 2, kind: input, shape index: {}]   ;;  %s1675_s3 = inlined_call_operand.hbm [shape: f32[8,128], index: 3, kind: output, shape index: {}]  }
   0x1   :  { %9 = vsyncpa [#allocation7], 0  ;;  %s28_s14 = sshll.u32 %s1673_s1, 4  ;;  %s29_s14 = int_to_ptr.hbm [resolvable:$true] %s28_s14 }
   0x2   :  { %10 = vsyncpa [#allocation5], 0  ;;  %s1566_s15 = smov [#allocation6]   ;;  %s15_s19 = sshll.u32 %s1672_s0, 4  ;;  %s16_s19 = int_to_ptr.hbm [resolvable:$true] %s15_s19 }
   0x3   :  { %s30_s16 = sshll.u32 %s1566_s15, 4  ;;  %s1567_s20 = smov 64   ;;  %s31_s16 = int_to_ptr.vmem [resolvable:$true] %s30_s16 }
   0x4   :  { %s1568_s21 = smov 4   ;;  %s1569_s22 = smov [#allocation3]  }
   0x5   :  { %36 = dma.hbm_to_vmem [thread:$0]  %s29_s14, 9216, %s31_s16, [#allocation7], %s1567_s20, %s1567_s20, %s1568_s21  }
   0x6   :  { %s17_s23 = sshll.u32 %s1569_s22, 4  ;;  %s1570_s1 = smov 128   ;;  %s18_s23 = int_to_ptr.vmem [resolvable:$true] %s17_s23 }
   0x7   :  { %s1571_s24 = smov 8   ;;  %s41_s27 = sshll.u32 %s1674_s2, 4  ;;  %s42_s27 = int_to_ptr.hbm [resolvable:$true] %s41_s27 }
   0x8   :  { %23 = dma.hbm_to_vmem [thread:$0]  %s16_s19, 384, %s18_s23, [#allocation4], %s1570_s1, %s1570_s1, %s1571_s24  }
   0x9   :  { %s1572_s0 = smov [#allocation8]  }
   0xa   :  { %s43_s28 = sshll.u32 %s1572_s0, 4  ;;  %s44_s28 = int_to_ptr.vmem [resolvable:$true] %s43_s28 }
   0xb   :  { %49 = dma.hbm_to_vmem [thread:$0]  %s42_s27, 256, %s44_s28, [#allocation7], %s1570_s1, %s1570_s1, %s1571_s24  }
   0xc   :  { %1560 = dma.done.wait [#allocation4], 384  }
   0xd   :  { %1561 = vsyncadd [#allocation4], 4294966912 }
   0xe   :  { %1562 = dma.done.wait [#allocation7], 9472  }
   0xf   :  { %1563 = vsyncadd [#allocation7], 4294957824  ;;  %v1373_v0 = vld [vmem:[#allocation6 + $0x38] sm:$0xff]  ;;  %v1372_v3 = vld [vmem:[#allocation6 + $0x30] sm:$0xff]  ;;  %s1573_s2 = smov 16   ;;  %s1574_s29 = smov 32  }
  0x10   :  { %v1381_v1 = vld [vmem:[#allocation6 + $0x78] sm:$0xff]  ;;  %288 = vmatpush.bf16.msra.mxu0 %v1373_v0  ;;  %v1380_v4 = vld [vmem:[#allocation6 + $0x70] sm:$0xff]  ;;  %v1371_v6 = vld [vmem:[#allocation6 + $0x28] sm:$0xff]  ;;  %s1576_s30 = smov [#allocation9]   ;;  %s1067_s7 = sshll.u32 %s1675_s3, 4  ;;  %s1068_s7 = int_to_ptr.hbm [resolvable:$true] %s1067_s7 }
  0x11   :  { %v1389_v2 = vld [vmem:[#allocation6 + $0xb8] sm:$0xff]  ;;  %302 = vmatpush.bf16.msra.mxu1 %v1381_v1  ;;  %v1388_v5 = vld [vmem:[#allocation6 + $0xb0] sm:$0xff]  ;;  %v1379_v7 = vld [vmem:[#allocation6 + $0x68] sm:$0xff]  ;;  %s1065_s4 = sshll.u32 %s1576_s30, 4  ;;  %s1066_s4 = int_to_ptr.vmem [resolvable:$true] %s1065_s4 }
  0x12   :  { %316 = vmatpush.bf16.msra.mxu2 %v1389_v2  ;;  %v1387_v8 = vld [vmem:[#allocation6 + $0xa8] sm:$0xff]  ;;  %v1370_v9 = vld [vmem:[#allocation6 + $0x20] sm:$0xff]  ;;  %v1369_v12 = vld [vmem:[#allocation6 + $0x18] sm:$0xff] }
  0x13   :  { %v1378_v10 = vld [vmem:[#allocation6 + $0x60] sm:$0xff]  ;;  %v1377_v13 = vld [vmem:[#allocation6 + $0x58] sm:$0xff]  ;;  %v1368_v15 = vld [vmem:[#allocation6 + $0x10] sm:$0xff] }
  0x14   :  { %289 = vmatpush.bf16.msra.mxu0 %v1372_v3  ;;  %v1386_v11 = vld [vmem:[#allocation6 + $0xa0] sm:$0xff]  ;;  %v1385_v14 = vld [vmem:[#allocation6 + $0x98] sm:$0xff]  ;;  %v1376_v16 = vld [vmem:[#allocation6 + $0x50] sm:$0xff] }
  0x15   :  { %303 = vmatpush.bf16.msra.mxu1 %v1380_v4  ;;  %v64_v17 = vld [vmem:[#allocation3] sm:$0xff]  ;;  %v65_v18 = vld [vmem:[#allocation3 + $0x8] sm:$0xff]  ;;  %v1366_v37 = vld [vmem:[#allocation6] sm:$0xff] }
  0x16   :  { %317 = vmatpush.bf16.msra.mxu2 %v1388_v5  ;;  %v1611_v19 = vld [vmem:[#allocation3 + $0x1] sm:$0xff]  ;;  %v1613_v20 = vld [vmem:[#allocation3 + $0x9] sm:$0xff]  ;;  %v66_v24 = vpack.c.bf16 %v64_v17, %v64_v17  ;;  %v67_v25 = vpack.c.bf16 %v65_v18, %v65_v18  ;;  %v1374_v38 = vld [vmem:[#allocation6 + $0x40] sm:$0xff] }
  0x17   :  { %v1384_v21 = vld [vmem:[#allocation6 + $0x90] sm:$0xff]  ;;  %v70_v26 = vpack.c.bf16 %v1611_v19, %v1611_v19  ;;  %v71_v27 = vpack.c.bf16 %v1613_v20, %v1613_v20  ;;  %v1367_v28 = vld [vmem:[#allocation6 + $0x8] sm:$0xff]  ;;  %v1382_v41 = vld [vmem:[#allocation6 + $0x80] sm:$0xff] }
  0x18   :  { %290 = vmatpush.bf16.msra.mxu0 %v1371_v6  ;;  %v72_v22 = vld [vmem:[#allocation3 + $0x2] sm:$0xff]  ;;  %v73_v23 = vld [vmem:[#allocation3 + $0xa] sm:$0xff]  ;;  %v78_v33 = vunpack.c.l.b16 %v66_v24  ;;  %v79_v34 = vunpack.c.l.b16 %v67_v25  ;;  %v1449_v46 = vld [vmem:[#allocation8] ss:$0 sm:$0xff] }
  0x19   :  { %304 = vmatpush.bf16.msra.mxu1 %v1379_v7  ;;  %v1375_v29 = vld [vmem:[#allocation6 + $0x48] sm:$0xff]  ;;  %v74_v30 = vpack.c.bf16 %v72_v22, %v72_v22  ;;  %v75_v31 = vpack.c.bf16 %v73_v23, %v73_v23  ;;  %v84_v35 = vunpack.c.l.b16 %v70_v26  ;;  %v85_v36 = vunpack.c.l.b16 %v71_v27 }
  0x1a   :  { %318 = vmatpush.bf16.msra.mxu2 %v1387_v8  ;;  %v1383_v32 = vld [vmem:[#allocation6 + $0x88] sm:$0xff]  ;;  %v80_v42 = vpack.c.b16 %v79_v34, %v78_v33 }
  0x1b   :  { %v90_v39 = vunpack.c.l.b16 %v74_v30  ;;  %v91_v40 = vunpack.c.l.b16 %v75_v31  ;;  %v86_v43 = vpack.c.b16 %v85_v36, %v84_v35  ;;  %v1405_v36 = vld [vmem:[#allocation6 + $0x138] sm:$0xff] }
  0x1c   :  { %291 = vmatpush.bf16.msra.mxu0 %v1370_v9 }
  0x1d   :  { %305 = vmatpush.bf16.msra.mxu1 %v1378_v10  ;;  %v92_v44 = vpack.c.b16 %v91_v40, %v90_v39  ;;  %v1413_v39 = vld [vmem:[#allocation6 + $0x178] sm:$0xff]  ;;  %v1403_v40 = vld [vmem:[#allocation6 + $0x128] sm:$0xff] }
  0x1e   :  { %319 = vmatpush.bf16.msra.mxu2 %v1386_v11 }
  0x20   :  { %292 = vmatpush.bf16.msra.mxu0 %v1369_v12 }
  0x21   :  { %306 = vmatpush.bf16.msra.mxu1 %v1377_v13 }
  0x22   :  { %320 = vmatpush.bf16.msra.mxu2 %v1385_v14 }
  0x24   :  { %293 = vmatpush.bf16.msra.mxu0 %v1368_v15 }
  0x25   :  { %307 = vmatpush.bf16.msra.mxu1 %v1376_v16 }
  0x26   :  { %321 = vmatpush.bf16.msra.mxu2 %v1384_v21 }
  0x28   :  { %294 = vmatpush.bf16.msra.mxu0 %v1367_v28 }
  0x29   :  { %308 = vmatpush.bf16.msra.mxu1 %v1375_v29 }
  0x2a   :  { %322 = vmatpush.bf16.msra.mxu2 %v1383_v32 }
  0x2c   :  { %295 = vmatpush.bf16.msra.mxu0 %v1366_v37  ;;  %v1404_v37 = vld [vmem:[#allocation6 + $0x130] sm:$0xff] }
  0x2d   :  { %309 = vmatpush.bf16.msra.mxu1 %v1374_v38  ;;  %v1397_v38 = vld [vmem:[#allocation6 + $0xf8] sm:$0xff] }
  0x2e   :  { %323 = vmatpush.bf16.msra.mxu2 %v1382_v41  ;;  %632 = vmatpush.bf16.msra.mxu3 %v1397_v38  ;;  %v1396_v41 = vld [vmem:[#allocation6 + $0xf0] sm:$0xff]  ;;  %v1452_v38 = vld [vmem:[#allocation8 + $0x3] ss:$0 sm:$0xff] }
  0x2f   :  { %296 = vmatmul.bf16.vlgmr.msra.gmra.mxu0 %v80_v42  ;;  %v1412_v42 = vld [vmem:[#allocation6 + $0x170] sm:$0xff] }
  0x30   :  { %310 = vmatmul.bf16.vlgmr.msra.gmra.mxu1 %v86_v43  ;;  %646 = vmatpush.bf16.msrb.mxu0 %v1405_v36  ;;  %v1402_v43 = vld [vmem:[#allocation6 + $0x120] sm:$0xff] }
  0x31   :  { %324 = vmatmul.bf16.vlgmr.msra.gmra.mxu2 %v92_v44  ;;  %660 = vmatpush.bf16.msrb.mxu1 %v1413_v39  ;;  %v1395_v44 = vld [vmem:[#allocation6 + $0xe8] sm:$0xff] }
  0x32   :  { %633 = vmatpush.bf16.msra.mxu3 %v1396_v41 }
  0x34   :  { %647 = vmatpush.bf16.msrb.mxu0 %v1404_v37 }
  0x35   :  { %661 = vmatpush.bf16.msrb.mxu1 %v1412_v42 }
  0x36   :  { %634 = vmatpush.bf16.msra.mxu3 %v1395_v44 }
  0x38   :  { %648 = vmatpush.bf16.msrb.mxu0 %v1403_v40 }
  0x3c   :  { %649 = vmatpush.bf16.msrb.mxu0 %v1402_v43 }
  0xac   :  { %v297_v45 = vpop.f32.mrf.mxu0 }
  0xad   :  { %v311_v47 = vpop.f32.mrf.mxu1  ;;  %v298_v48 = vadd.f32 %v1449_v46, %v297_v45  ;;  %v1411_v45 = vld [vmem:[#allocation6 + $0x168] sm:$0xff] }
  0xae   :  { %662 = vmatpush.bf16.msrb.mxu1 %v1411_v45 }
  0xaf   :  { %v312_v51 = vadd.f32 %v311_v47, %v298_v48  ;;  %v1394_v47 = vld [vmem:[#allocation6 + $0xe0] sm:$0xff] }
  0xb0   :  { %v1410_v48 = vld [vmem:[#allocation6 + $0x160] sm:$0xff]  ;;  %635 = vmatpush.bf16.msra.mxu3 %v1394_v47 }
  0xb2   :  { %663 = vmatpush.bf16.msrb.mxu1 %v1410_v48 }
  0xb4   :  { %v325_v49 = vpop.f32.mrf.mxu2  ;;  %v299_v50 = vpop.f32.mrf.mxu0 }
  0xb5   :  { %v300_v52 = vadd.f32 %v1449_v46, %v299_v50  ;;  %v313_v53 = vpop.f32.mrf.mxu1  ;;  %v326_v54 = vadd.f32 %v325_v49, %v312_v51  ;;  %v1401_v46 = vld [vmem:[#allocation6 + $0x118] sm:$0xff]  ;;  %v1400_v49 = vld [vmem:[#allocation6 + $0x110] sm:$0xff] }
  0xb6   :  { %650 = vmatpush.bf16.msrb.mxu0 %v1401_v46  ;;  %v1393_v50 = vld [vmem:[#allocation6 + $0xd8] sm:$0xff] }
  0xb7   :  { %v314_v55 = vadd.f32 %v313_v53, %v300_v52  ;;  %v330_v58 = vmax.f32 %v326_v54, 0.0  ;;  %v1409_v51 = vld [vmem:[#allocation6 + $0x158] sm:$0xff]  ;;  %v1399_v52 = vld [vmem:[#allocation6 + $0x108] sm:$0xff]  ;;  %636 = vmatpush.bf16.msra.mxu3 %v1393_v50 }
  0xb8   :  { %664 = vmatpush.bf16.msrb.mxu1 %v1409_v51 }
  0xba   :  { %651 = vmatpush.bf16.msrb.mxu0 %v1400_v49 }
  0xbc   :  { %v327_v56 = vpop.f32.mrf.mxu2 }
  0xbd   :  { %v328_v57 = vadd.f32 %v327_v56, %v314_v55  ;;  %v1392_v55 = vld [vmem:[#allocation6 + $0xd0] sm:$0xff] }
  0xbe   :  { %v1408_v56 = vld [vmem:[#allocation6 + $0x150] sm:$0xff]  ;;  %652 = vmatpush.bf16.msrb.mxu0 %v1399_v52  ;;  %637 = vmatpush.bf16.msra.mxu3 %v1392_v55 }
  0xbf   :  { %v331_v59 = vmax.f32 %v328_v57, 0.0  ;;  %v1575_v57 = vmov 0.0   ;;  %665 = vmatpush.bf16.msrb.mxu1 %v1408_v56 }
  0xc0   :  { %62 = vst [vmem:[#allocation2 + $0x7] sm:$0x1] %v1575_v57 }
  0xc1   :  { %v334_v60 = vadd.f32 %v331_v59, %v330_v58  ;;  %63 = vst [vmem:[#allocation2 + $0x18] sm:$0x1] %v1575_v57 }
  0xc3   :  { %v335_v61 = vrot.slane %v334_v60, 4 }
  0xc5   :  { %v336_v62 = vadd.f32 %v335_v61, %v334_v60  ;;  %v1391_v61 = vld [vmem:[#allocation6 + $0xc8] sm:$0xff] }
  0xc6   :  { %638 = vmatpush.bf16.msra.mxu3 %v1391_v61 }
  0xc7   :  { %v337_v63 = vrot.slane %v336_v62, 2 }
  0xc9   :  { %v338_v0 = vadd.f32 %v337_v63, %v336_v62  ;;  %v1407_v62 = vld [vmem:[#allocation6 + $0x148] sm:$0xff]  ;;  %v1390_v63 = vld [vmem:[#allocation6 + $0xc0] sm:$0xff] }
  0xca   :  { %666 = vmatpush.bf16.msrb.mxu1 %v1407_v62  ;;  %639 = vmatpush.bf16.msra.mxu3 %v1390_v63 }
  0xcb   :  { %v339_v1 = vrot.slane %v338_v0, 1 }
  0xcd   :  { %v340_v2 = vadd.f32 %v339_v1, %v338_v0  ;;  %v1406_v0 = vld [vmem:[#allocation6 + $0x140] sm:$0xff] }
  0xce   :  { %667 = vmatpush.bf16.msrb.mxu1 %v1406_v0 }
  0xcf   :  { %341 = vrot.lane.b32.xlu0 %v340_v2, %s1568_s21 }
 0x141   :  { %v342_v3 = vpop.permute.xlu0 %341 }
 0x142   :  { %v343_v4 = vadd.f32 %v342_v3, %v340_v2 }
 0x144   :  { %344 = vrot.lane.b32.xlu0 %v343_v4, %s1571_s24 }
 0x1b6   :  { %v345_v5 = vpop.permute.xlu0 %344 }
 0x1b7   :  { %v346_v6 = vadd.f32 %v345_v5, %v343_v4 }
 0x1b9   :  { %347 = vrot.lane.b32.xlu1 %v346_v6, %s1573_s2 }
 0x22b   :  { %v348_v7 = vpop.permute.xlu1 %347 }
 0x22c   :  { %v349_v8 = vadd.f32 %v348_v7, %v346_v6 }
 0x22e   :  { %350 = vrot.lane.b32.xlu1 %v349_v8, %s1574_s29 }
 0x2a0   :  { %v351_v9 = vpop.permute.xlu1 %350 }
 0x2a1   :  { %v352_v10 = vadd.f32 %v351_v9, %v349_v8  ;;  %v1450_v8 = vld [vmem:[#allocation8 + $0x1] ss:$0 sm:$0xff] }
 0x2a3   :  { %353 = vrot.lane.b32.xlu2 %v352_v10, %s1567_s20 }
 0x2fd   :  { %v354_v11 = vpop.permute.xlu2 %353 }
 0x2fe   :  { %v355_v12 = vadd.f32 %v354_v11, %v352_v10  ;;  %v1451_v10 = vld [vmem:[#allocation8 + $0x2] ss:$0 sm:$0xff] }
 0x300   :  { %v356_v13 = vmul.f32 0.001953125, %v355_v12 }
 0x302   :  { %v357_v14 = vperm.slane %v356_v13, 0 }
 0x304   :  { %v1624_v15 = vsub.f32 %v330_v58, %v357_v14  ;;  %v1626_v16 = vsub.f32 %v331_v59, %v357_v14  ;;  %v1398_v59 = vld [vmem:[#allocation6 + $0x100] sm:$0xff] }
 0x305   :  { %653 = vmatpush.bf16.msrb.mxu0 %v1398_v59 }
 0x306   :  { %v360_v17 = vmul.f32 %v1624_v15, %v1624_v15  ;;  %v361_v18 = vmul.f32 %v1626_v16, %v1626_v16 }
 0x308   :  { %v362_v21 = vadd.f32 %v361_v18, %v360_v17 }
 0x30a   :  { %v363_v22 = vrot.slane %v362_v21, 4 }
 0x30c   :  { %v364_v23 = vadd.f32 %v363_v22, %v362_v21 }
 0x30e   :  { %v365_v24 = vrot.slane %v364_v23, 2 }
 0x310   :  { %v366_v25 = vadd.f32 %v365_v24, %v364_v23 }
 0x312   :  { %v367_v26 = vrot.slane %v366_v25, 1 }
 0x314   :  { %v368_v27 = vadd.f32 %v367_v26, %v366_v25 }
 0x316   :  { %369 = vrot.lane.b32.xlu2 %v368_v27, %s1568_s21 }
 0x370   :  { %v370_v28 = vpop.permute.xlu2 %369 }
 0x371   :  { %v371_v29 = vadd.f32 %v370_v28, %v368_v27 }
 0x373   :  { %372 = vrot.lane.b32.xlu0 %v371_v29, %s1571_s24 }
 0x3e5   :  { %v373_v30 = vpop.permute.xlu0 %372 }
 0x3e6   :  { %v374_v31 = vadd.f32 %v373_v30, %v371_v29 }
 0x3e8   :  { %375 = vrot.lane.b32.xlu1 %v374_v31, %s1573_s2 }
 0x45a   :  { %v376_v32 = vpop.permute.xlu1 %375 }
 0x45b   :  { %v377_v33 = vadd.f32 %v376_v32, %v374_v31 }
 0x45d   :  { %378 = vrot.lane.b32.xlu2 %v377_v33, %s1574_s29 }
 0x4b7   :  { %v379_v34 = vpop.permute.xlu2 %378 }
 0x4b8   :  { %v380_v35 = vadd.f32 %v379_v34, %v377_v33 }
 0x4ba   :  { %381 = vrot.lane.b32.xlu0 %v380_v35, %s1567_s20 }
 0x52c   :  { %v382_v53 = vpop.permute.xlu0 %381 }
 0x52d   :  { %v383_v54 = vadd.f32 %v382_v53, %v380_v35 }
 0x52f   :  { %v384_v58 = vmul.f32 0.001953125, %v383_v54 }
 0x531   :  { %v385_v60 = vadd.f32 1e-05, %v384_v58 }
 0x533   :  { %1458 = vrsqrt.f32 %v385_v60  ;;  %vm392_vm1 = vweird.f32 %v385_v60 }
 0x539   :  { %v1459_v1 = vpop.eup %1458 }
 0x53a   :  { %v387_v2 = vmul.f32 %v1459_v1, %v385_v60  ;;  %vm393_vm0 = vweird.f32 %v1459_v1 }
 0x53b   :  { %vm394_vm2 = vmor %vm392_vm1, %vm393_vm0 }
 0x53c   :  { %v388_v3 = vmul.f32 %v1459_v1, %v387_v2 }
 0x53e   :  { %v389_v4 = vmul.f32 0.5, %v388_v3 }
 0x540   :  { %v390_v5 = vsub.f32 1.5, %v389_v4 }
 0x542   :  { %v391_v6 = vmul.f32 %v1459_v1, %v390_v5 }
 0x544   :  { %v395_v7 = vsel %vm394_vm2, %v1459_v1, %v391_v6 }
 0x545   :  { %v396_v9 = vperm.slane %v395_v7, 0 }
 0x547   :  { %v397_v11 = vmul.f32 %v396_v9, %v1624_v15  ;;  %v398_v12 = vmul.f32 %v396_v9, %v1626_v16 }
 0x549   :  { %v400_v13 = vmul.f32 %v1450_v8, %v397_v11  ;;  %v401_v14 = vmul.f32 %v1450_v8, %v398_v12 }
 0x54b   :  { %v403_v17 = vadd.f32 %v1451_v10, %v400_v13  ;;  %v404_v18 = vadd.f32 %v1451_v10, %v401_v14 }
 0x54d   :  { %405 = vst [vmem:[#allocation2 + $0x8] sm:$0xff] %v403_v17  ;;  %v413_v21 = vpack.c.bf16 %v403_v17, %v403_v17  ;;  %v414_v22 = vpack.c.bf16 %v404_v18, %v404_v18 }
 0x54e   :  { %406 = vst [vmem:[#allocation2 + $0x10] sm:$0xff] %v404_v18 }
 0x54f   :  { %v427_v23 = vunpack.c.l.b16 %v413_v21  ;;  %v428_v24 = vunpack.c.l.b16 %v414_v22 }
 0x551   :  { %v429_v25 = vpack.c.b16 %v428_v24, %v427_v23 }
 0x553   :  { %654 = vmatmul.bf16.vlgmr.msrb.gmra.mxu0 %v429_v25 }
 0x554   :  { %v407_v26 = vld [vmem:[#allocation2 + $0x7] sm:$0xff] }
 0x555   :  { %v408_v27 = vld [vmem:[#allocation2 + $0xf] sm:$0xff]  ;;  %v409_v28 = vpack.c.bf16 %v407_v26, %v407_v26 }
 0x556   :  { %v415_v29 = vld [vmem:[#allocation2 + $0x9] sm:$0xff]  ;;  %v416_v30 = vld [vmem:[#allocation2 + $0x11] sm:$0xff]  ;;  %v410_v15 = vpack.c.bf16 %v408_v27, %v408_v27 }
 0x557   :  { %v417_v31 = vpack.c.bf16 %v415_v29, %v415_v29  ;;  %v418_v16 = vpack.c.bf16 %v416_v30, %v416_v30  ;;  %v421_v32 = vunpack.c.l.b16 %v409_v28 }
 0x558   :  { %v422_v33 = vunpack.c.l.b16 %v410_v15  ;;  %v1421_v15 = vld [vmem:[#allocation6 + $0x1b8] sm:$0xff] }
 0x559   :  { %v433_v34 = vunpack.c.l.b16 %v417_v31  ;;  %v434_v35 = vunpack.c.l.b16 %v418_v16  ;;  %v1429_v31 = vld [vmem:[#allocation6 + $0x1f8] sm:$0xff]  ;;  %959 = vmatpush.bf16.msrb.mxu2 %v1421_v15 }
 0x55a   :  { %v423_v36 = vpack.c.b16 %v422_v33, %v421_v32  ;;  %v1437_v16 = vld [vmem:[#allocation6 + $0x238] sm:$0xff]  ;;  %972 = vmatpush.bf16.msrb.mxu3 %v1429_v31  ;;  %v1420_v32 = vld [vmem:[#allocation6 + $0x1b0] sm:$0xff] }
 0x55b   :  { %v435_v37 = vpack.c.b16 %v434_v35, %v433_v34  ;;  %985 = vmatpush.bf16.msra.mxu0 %v1437_v16  ;;  %v1428_v33 = vld [vmem:[#allocation6 + $0x1f0] sm:$0xff]  ;;  %v1419_v35 = vld [vmem:[#allocation6 + $0x1a8] sm:$0xff] }
 0x55c   :  { %640 = vmatmul.bf16.vlgmr.msra.gmra.mxu3 %v423_v36  ;;  %v1436_v34 = vld [vmem:[#allocation6 + $0x230] sm:$0xff]  ;;  %v1427_v36 = vld [vmem:[#allocation6 + $0x1e8] sm:$0xff] }
 0x55d   :  { %668 = vmatmul.bf16.vlgmr.msrb.gmra.mxu1 %v435_v37  ;;  %960 = vmatpush.bf16.msrb.mxu2 %v1420_v32  ;;  %v1435_v37 = vld [vmem:[#allocation6 + $0x228] sm:$0xff] }
 0x55e   :  { %973 = vmatpush.bf16.msrb.mxu3 %v1428_v33 }
 0x55f   :  { %986 = vmatpush.bf16.msra.mxu0 %v1436_v34 }
 0x561   :  { %961 = vmatpush.bf16.msrb.mxu2 %v1419_v35 }
 0x562   :  { %974 = vmatpush.bf16.msrb.mxu3 %v1427_v36 }
 0x563   :  { %987 = vmatpush.bf16.msra.mxu0 %v1435_v37 }
 0x5d0   :  { %v655_v39 = vpop.f32.mrf.mxu0 }
 0x5d8   :  { %v657_v46 = vpop.f32.mrf.mxu0 }
 0x5da   :  { %v669_v41 = vpop.f32.mrf.mxu1 }
 0x5df   :  { %v641_v40 = vpop.f32.mrf.mxu3 }
 0x5e0   :  { %v642_v42 = vadd.f32 %v1452_v38, %v641_v40  ;;  %v1434_v40 = vld [vmem:[#allocation6 + $0x220] sm:$0xff] }
 0x5e1   :  { %988 = vmatpush.bf16.msra.mxu0 %v1434_v40 }
 0x5e2   :  { %v656_v43 = vadd.f32 %v655_v39, %v642_v42  ;;  %v671_v49 = vpop.f32.mrf.mxu1  ;;  %v1426_v39 = vld [vmem:[#allocation6 + $0x1e0] sm:$0xff]  ;;  %v1425_v42 = vld [vmem:[#allocation6 + $0x1d8] sm:$0xff] }
 0x5e3   :  { %975 = vmatpush.bf16.msrb.mxu3 %v1426_v39 }
 0x5e4   :  { %v670_v47 = vadd.f32 %v669_v41, %v656_v43  ;;  %v1417_v41 = vld [vmem:[#allocation6 + $0x198] sm:$0xff] }
 0x5e5   :  { %v1433_v43 = vld [vmem:[#allocation6 + $0x218] sm:$0xff] }
 0x5e6   :  { %v674_v51 = vmax.f32 %v670_v47, 0.0  ;;  %989 = vmatpush.bf16.msra.mxu0 %v1433_v43  ;;  %v1424_v47 = vld [vmem:[#allocation6 + $0x1d0] sm:$0xff] }
 0x5e7   :  { %v643_v44 = vpop.f32.mrf.mxu3  ;;  %976 = vmatpush.bf16.msrb.mxu3 %v1425_v42 }
 0x5e8   :  { %v644_v45 = vadd.f32 %v1452_v38, %v643_v44  ;;  %v1418_v38 = vld [vmem:[#allocation6 + $0x1a0] sm:$0xff] }
 0x5e9   :  { %962 = vmatpush.bf16.msrb.mxu2 %v1418_v38 }
 0x5ea   :  { %v658_v48 = vadd.f32 %v657_v46, %v644_v45  ;;  %v1416_v46 = vld [vmem:[#allocation6 + $0x190] sm:$0xff] }
 0x5eb   :  { %977 = vmatpush.bf16.msrb.mxu3 %v1424_v47 }
 0x5ec   :  { %v672_v50 = vadd.f32 %v671_v49, %v658_v48  ;;  %v1432_v48 = vld [vmem:[#allocation6 + $0x210] sm:$0xff] }
 0x5ed   :  { %963 = vmatpush.bf16.msrb.mxu2 %v1417_v41  ;;  %990 = vmatpush.bf16.msra.mxu0 %v1432_v48 }
 0x5ee   :  { %v675_v52 = vmax.f32 %v672_v50, 0.0  ;;  %v1415_v50 = vld [vmem:[#allocation6 + $0x188] sm:$0xff] }
 0x5f0   :  { %v678_v53 = vadd.f32 %v675_v52, %v674_v51 }
 0x5f1   :  { %964 = vmatpush.bf16.msrb.mxu2 %v1416_v46 }
 0x5f2   :  { %v679_v54 = vrot.slane %v678_v53, 4 }
 0x5f4   :  { %v680_v55 = vadd.f32 %v679_v54, %v678_v53  ;;  %v1414_v54 = vld [vmem:[#allocation6 + $0x180] sm:$0xff] }
 0x5f5   :  { %965 = vmatpush.bf16.msrb.mxu2 %v1415_v50 }
 0x5f6   :  { %v681_v56 = vrot.slane %v680_v55, 2 }
 0x5f8   :  { %v682_v57 = vadd.f32 %v681_v56, %v680_v55  ;;  %v1422_v55 = vld [vmem:[#allocation6 + $0x1c0] sm:$0xff] }
 0x5f9   :  { %v1430_v56 = vld [vmem:[#allocation6 + $0x200] sm:$0xff]  ;;  %966 = vmatpush.bf16.msrb.mxu2 %v1414_v54 }
 0x5fa   :  { %v683_v58 = vrot.slane %v682_v57, 1 }
 0x5fc   :  { %v684_v59 = vadd.f32 %v683_v58, %v682_v57 }
 0x5fe   :  { %685 = vrot.lane.b32.xlu1 %v684_v59, %s1568_s21 }
 0x670   :  { %v686_v60 = vpop.permute.xlu1 %685 }
 0x671   :  { %v687_v61 = vadd.f32 %v686_v60, %v684_v59 }
 0x673   :  { %688 = vrot.lane.b32.xlu2 %v687_v61, %s1571_s24 }
 0x6cd   :  { %v689_v62 = vpop.permute.xlu2 %688 }
 0x6ce   :  { %v690_v63 = vadd.f32 %v689_v62, %v687_v61 }
 0x6d0   :  { %691 = vrot.lane.b32.xlu0 %v690_v63, %s1573_s2 }
 0x742   :  { %v692_v0 = vpop.permute.xlu0 %691 }
 0x743   :  { %v693_v1 = vadd.f32 %v692_v0, %v690_v63  ;;  %v1453_v0 = vld [vmem:[#allocation8 + $0x4] ss:$0 sm:$0xff] }
 0x745   :  { %694 = vrot.lane.b32.xlu1 %v693_v1, %s1574_s29 }
 0x7b7   :  { %v695_v2 = vpop.permute.xlu1 %694 }
 0x7b8   :  { %v696_v3 = vadd.f32 %v695_v2, %v693_v1  ;;  %v1454_v2 = vld [vmem:[#allocation8 + $0x5] ss:$0 sm:$0xff] }
 0x7ba   :  { %697 = vrot.lane.b32.xlu2 %v696_v3, %s1567_s20 }
 0x814   :  { %v698_v4 = vpop.permute.xlu2 %697 }
 0x815   :  { %v699_v5 = vadd.f32 %v698_v4, %v696_v3 }
 0x817   :  { %v700_v6 = vmul.f32 0.001953125, %v699_v5 }
 0x819   :  { %v701_v7 = vperm.slane %v700_v6, 0 }
 0x81b   :  { %v1644_v8 = vsub.f32 %v674_v51, %v701_v7  ;;  %v1646_v9 = vsub.f32 %v675_v52, %v701_v7  ;;  %v1423_v51 = vld [vmem:[#allocation6 + $0x1c8] sm:$0xff] }
 0x81c   :  { %v1431_v52 = vld [vmem:[#allocation6 + $0x208] sm:$0xff]  ;;  %978 = vmatpush.bf16.msrb.mxu3 %v1423_v51 }
 0x81d   :  { %v704_v10 = vmul.f32 %v1644_v8, %v1644_v8  ;;  %v705_v11 = vmul.f32 %v1646_v9, %v1646_v9  ;;  %991 = vmatpush.bf16.msra.mxu0 %v1431_v52 }
 0x81f   :  { %v706_v12 = vadd.f32 %v705_v11, %v704_v10 }
 0x820   :  { %979 = vmatpush.bf16.msrb.mxu3 %v1422_v55 }
 0x821   :  { %v707_v13 = vrot.slane %v706_v12, 4  ;;  %992 = vmatpush.bf16.msra.mxu0 %v1430_v56 }
 0x823   :  { %v708_v14 = vadd.f32 %v707_v13, %v706_v12 }
 0x825   :  { %v709_v17 = vrot.slane %v708_v14, 2 }
 0x827   :  { %v710_v18 = vadd.f32 %v709_v17, %v708_v14 }
 0x829   :  { %v711_v21 = vrot.slane %v710_v18, 1 }
 0x82b   :  { %v712_v22 = vadd.f32 %v711_v21, %v710_v18 }
 0x82d   :  { %713 = vrot.lane.b32.xlu0 %v712_v22, %s1568_s21 }
 0x89f   :  { %v714_v23 = vpop.permute.xlu0 %713 }
 0x8a0   :  { %v715_v24 = vadd.f32 %v714_v23, %v712_v22 }
 0x8a2   :  { %716 = vrot.lane.b32.xlu1 %v715_v24, %s1571_s24 }
 0x914   :  { %v717_v25 = vpop.permute.xlu1 %716 }
 0x915   :  { %v718_v26 = vadd.f32 %v717_v25, %v715_v24 }
 0x917   :  { %719 = vrot.lane.b32.xlu2 %v718_v26, %s1573_s2 }
 0x971   :  { %v720_v27 = vpop.permute.xlu2 %719 }
 0x972   :  { %v721_v28 = vadd.f32 %v720_v27, %v718_v26 }
 0x974   :  { %722 = vrot.lane.b32.xlu0 %v721_v28, %s1574_s29 }
 0x9e6   :  { %v723_v29 = vpop.permute.xlu0 %722 }
 0x9e7   :  { %v724_v30 = vadd.f32 %v723_v29, %v721_v28 }
 0x9e9   :  { %725 = vrot.lane.b32.xlu1 %v724_v30, %s1567_s20 }
 0xa5b   :  { %v726_v44 = vpop.permute.xlu1 %725 }
 0xa5c   :  { %v727_v45 = vadd.f32 %v726_v44, %v724_v30 }
 0xa5e   :  { %v728_v49 = vmul.f32 0.001953125, %v727_v45 }
 0xa60   :  { %v729_v53 = vadd.f32 1e-05, %v728_v49 }
 0xa62   :  { %1460 = vrsqrt.f32 %v729_v53  ;;  %vm736_vm4 = vweird.f32 %v729_v53 }
 0xa68   :  { %v1461_v57 = vpop.eup %1460 }
 0xa69   :  { %v731_v58 = vmul.f32 %v1461_v57, %v729_v53  ;;  %vm737_vm3 = vweird.f32 %v1461_v57 }
 0xa6a   :  { %vm738_vm5 = vmor %vm736_vm4, %vm737_vm3 }
 0xa6b   :  { %v732_v59 = vmul.f32 %v1461_v57, %v731_v58 }
 0xa6d   :  { %v733_v60 = vmul.f32 0.5, %v732_v59 }
 0xa6f   :  { %v734_v61 = vsub.f32 1.5, %v733_v60 }
 0xa71   :  { %v735_v62 = vmul.f32 %v1461_v57, %v734_v61 }
 0xa73   :  { %v739_v63 = vsel %vm738_vm5, %v1461_v57, %v735_v62 }
 0xa74   :  { %v740_v1 = vperm.slane %v739_v63, 0 }
 0xa76   :  { %v741_v3 = vmul.f32 %v740_v1, %v1644_v8  ;;  %v742_v4 = vmul.f32 %v740_v1, %v1646_v9  ;;  %v1455_v9 = vld [vmem:[#allocation8 + $0x6] ss:$0 sm:$0xff] }
 0xa78   :  { %v744_v5 = vmul.f32 %v1453_v0, %v741_v3  ;;  %v745_v6 = vmul.f32 %v1453_v0, %v742_v4 }
 0xa7a   :  { %v747_v7 = vadd.f32 %v1454_v2, %v744_v5  ;;  %v748_v10 = vadd.f32 %v1454_v2, %v745_v6  ;;  %v1456_v6 = vld [vmem:[#allocation8 + $0x7] ss:$0 sm:$0xff] }
 0xa7c   :  { %v751_v11 = vadd.f32 %v747_v7, %v1611_v19  ;;  %v752_v12 = vadd.f32 %v748_v10, %v1613_v20  ;;  %v1457_v10 = vld [vmem:[#allocation8 + $0x8] ss:$0 sm:$0xff] }
 0xa7e   :  { %753 = vst [vmem:[#allocation2 + $0x8] sm:$0xff] %v751_v11 }
 0xa7f   :  { %754 = vst [vmem:[#allocation2 + $0x10] sm:$0xff] %v752_v12 }
 0xa86   :  { %v756_v13 = vld [vmem:[#allocation2 + $0x7] ss:$2 sm:$0xff]  ;;  %v759_v14 = vld [vmem:[#allocation2 + $0x8] ss:$2 sm:$0xff] }
 0xa87   :  { %v762_v17 = vld [vmem:[#allocation2 + $0x9] ss:$2 sm:$0xff]  ;;  %v757_v18 = vpack.c.bf16 %v756_v13, %v756_v13  ;;  %v760_v21 = vpack.c.bf16 %v759_v14, %v759_v14 }
 0xa88   :  { %v763_v22 = vpack.c.bf16 %v762_v17, %v762_v17 }
 0xa89   :  { %967 = vmatmul.bf16.vlgmr.msrb.gmra.mxu2 %v757_v18  ;;  %980 = vmatmul.bf16.vlgmr.msrb.gmra.mxu3 %v760_v21 }
 0xa8a   :  { %993 = vmatmul.bf16.vlgmr.msra.gmra.mxu0 %v763_v22 }
 0xb07   :  { %v994_v8 = vpop.f32.mrf.mxu0 }
 0xb0c   :  { %v968_v23 = vpop.f32.mrf.mxu2  ;;  %v981_v24 = vpop.f32.mrf.mxu3 }
 0xb0d   :  { %v969_v25 = vadd.f32 %v1455_v9, %v968_v23 }
 0xb0f   :  { %v982_v26 = vadd.f32 %v981_v24, %v969_v25  ;;  %v996_v19 = vpop.f32.mrf.mxu0 }
 0xb11   :  { %v995_v27 = vadd.f32 %v994_v8, %v982_v26 }
 0xb13   :  { %v998_v20 = vmax.f32 %v995_v27, 0.0 }
 0xb14   :  { %v970_v28 = vpop.f32.mrf.mxu2  ;;  %v983_v29 = vpop.f32.mrf.mxu3 }
 0xb15   :  { %v1001_v30 = vrot.slane %v998_v20, 4 }
 0xb17   :  { %v1002_v15 = vadd.f32 %v1001_v30, %v998_v20 }
 0xb19   :  { %v1003_v31 = vrot.slane %v1002_v15, 2 }
 0xb1b   :  { %v1004_v16 = vadd.f32 %v1003_v31, %v1002_v15 }
 0xb1d   :  { %v1005_v32 = vrot.slane %v1004_v16, 1 }
 0xb1f   :  { %v1006_v33 = vadd.f32 %v1005_v32, %v1004_v16 }
 0xb21   :  { %1007 = vrot.lane.b32.xlu2 %v1006_v33, %s1571_s24 }
 0xb7b   :  { %v1008_v34 = vpop.permute.xlu2 %1007 }
 0xb7c   :  { %v1009_v35 = vadd.f32 %v1008_v34, %v1006_v33 }
 0xb7e   :  { %1010 = vrot.lane.b32.xlu0 %v1009_v35, %s1573_s2 }
 0xbf0   :  { %v1011_v36 = vpop.permute.xlu0 %1010 }
 0xbf1   :  { %v1012_v37 = vadd.f32 %v1011_v36, %v1009_v35 }
 0xbf3   :  { %1013 = vrot.lane.b32.xlu1 %v1012_v37, %s1574_s29 }
 0xc65   :  { %v1014_v38 = vpop.permute.xlu1 %1013 }
 0xc66   :  { %v1015_v39 = vadd.f32 %v1014_v38, %v1012_v37 }
 0xc68   :  { %1016 = vrot.lane.b32.xlu2 %v1015_v39, %s1567_s20 }
 0xcc2   :  { %v1017_v40 = vpop.permute.xlu2 %1016 }
 0xcc3   :  { %v1018_v41 = vadd.f32 %v1017_v40, %v1015_v39 }
 0xcc5   :  { %v1019_v42 = vmul.f32 0.0078125, %v1018_v41 }
 0xcc7   :  { %v1020_v43 = vperm.slane %v1019_v42, 0 }
 0xcc9   :  { %v1021_v44 = vsub.f32 %v998_v20, %v1020_v43 }
 0xccb   :  { %v1022_v45 = vmul.f32 %v1021_v44, %v1021_v44 }
 0xccd   :  { %v1023_v46 = vrot.slane %v1022_v45, 4 }
 0xccf   :  { %v1024_v47 = vadd.f32 %v1023_v46, %v1022_v45 }
 0xcd1   :  { %v1025_v48 = vrot.slane %v1024_v47, 2 }
 0xcd3   :  { %v1026_v49 = vadd.f32 %v1025_v48, %v1024_v47 }
 0xcd5   :  { %v1027_v50 = vrot.slane %v1026_v49, 1 }
 0xcd7   :  { %v1028_v51 = vadd.f32 %v1027_v50, %v1026_v49 }
 0xcd9   :  { %1029 = vrot.lane.b32.xlu0 %v1028_v51, %s1571_s24 }
 0xd4b   :  { %v1030_v52 = vpop.permute.xlu0 %1029 }
 0xd4c   :  { %v1031_v53 = vadd.f32 %v1030_v52, %v1028_v51 }
 0xd4e   :  { %1032 = vrot.lane.b32.xlu1 %v1031_v53, %s1573_s2 }
 0xdc0   :  { %v1033_v54 = vpop.permute.xlu1 %1032 }
 0xdc1   :  { %v1034_v55 = vadd.f32 %v1033_v54, %v1031_v53 }
 0xdc3   :  { %1035 = vrot.lane.b32.xlu2 %v1034_v55, %s1574_s29 }
 0xe1d   :  { %v1036_v56 = vpop.permute.xlu2 %1035 }
 0xe1e   :  { %v1037_v57 = vadd.f32 %v1036_v56, %v1034_v55 }
 0xe20   :  { %1038 = vrot.lane.b32.xlu0 %v1037_v57, %s1567_s20 }
 0xe92   :  { %v1039_v58 = vpop.permute.xlu0 %1038 }
 0xe93   :  { %v1040_v59 = vadd.f32 %v1039_v58, %v1037_v57 }
 0xe95   :  { %v1041_v60 = vmul.f32 0.0078125, %v1040_v59 }
 0xe97   :  { %v1042_v61 = vadd.f32 1e-05, %v1041_v60 }
 0xe99   :  { %1462 = vrsqrt.f32 %v1042_v61  ;;  %vm1049_vm7 = vweird.f32 %v1042_v61 }
 0xe9f   :  { %v1463_v62 = vpop.eup %1462 }
 0xea0   :  { %v1044_v63 = vmul.f32 %v1463_v62, %v1042_v61  ;;  %vm1050_vm6 = vweird.f32 %v1463_v62 }
 0xea1   :  { %vm1051_vm8 = vmor %vm1049_vm7, %vm1050_vm6 }
 0xea2   :  { %v1045_v0 = vmul.f32 %v1463_v62, %v1044_v63 }
 0xea4   :  { %v1046_v1 = vmul.f32 0.5, %v1045_v0 }
 0xea6   :  { %v1047_v2 = vsub.f32 1.5, %v1046_v1 }
 0xea8   :  { %v1048_v3 = vmul.f32 %v1463_v62, %v1047_v2 }
 0xeaa   :  { %v1052_v4 = vsel %vm1051_vm8, %v1463_v62, %v1048_v3 }
 0xeab   :  { %v1053_v5 = vperm.slane %v1052_v4, 0 }
 0xead   :  { %v1054_v7 = vmul.f32 %v1053_v5, %v1021_v44 }
 0xeaf   :  { %v1056_v11 = vmul.f32 %v1456_v6, %v1054_v7 }
 0xeb1   :  { %v1058_v12 = vadd.f32 %v1457_v10, %v1056_v11 }
 0xeb3   :  { %1059 = vst [vmem:[#allocation9] sm:$0xff] %v1058_v12 }
 0xeb4   :  { %1070 = dma.vmem_to_hbm [thread:$0]  %s1066_s4, 128, %s1068_s7, [#allocation5]  }
 0xeb5   :  { %1564 = dma.done.wait [#allocation5], 128  }
 0xeb6   :  { %1565 = vsyncadd [#allocation5], 4294967168 }
 0xeb7   :  { %1075 = vsyncpa [#allocation4], 1 }
 0xeb8   :  { %1076 = vsyncpa [#allocation7], 1 }
 0xeb9   :  { %1077 = vsyncpa [#allocation5], 1 }

</bundles_post_ra>
